<compile_context>
chip_gen: v6e
topology: v6e:2x2x1
jax: 0.10.0
libtpu: 0.0.40
codegen_flags: <defaults>
</compile_context>

<pallas_src>
import math

import jax
import jax.numpy as jnp
from jax import lax
from jax.experimental import pallas as pl
from jax.experimental.pallas import tpu as pltpu

LANE = 128


def _ru(x, m=LANE):
    return (x + m - 1) // m * m


def _vmem_limit_bytes():
    # Explicit scoped-VMEM override (review: ~100 MiB v5e/v6e, ~56 MiB v7x).
    try:
        cap = pltpu.get_tpu_info().vmem_capacity_bytes
        return int(min(100 * 1024 * 1024, (cap * 7) // 8))
    except Exception:
        return 64 * 1024 * 1024


def _resident(block_shape, index_map):
    # Constant-index weight blocks are fetched once; single-buffer them so the
    # default Buffered(2) does not hold a useless second copy in VMEM.
    return pl.BlockSpec(block_shape, index_map, pipeline_mode=pl.Buffered(1))


def _sigmoid(x):
    # exp on the EUP + approximate reciprocal keeps the divide off the VPU.
    return pl.reciprocal(1.0 + jnp.exp(-x), approx=True)


# ----------------------------------------------------------------------------
# Encoder: tiled (im2col conv matmul) + ReLU + global-avg-pool + embed Linear
# ----------------------------------------------------------------------------
def cnn_encoder(images, params, *, tile_rows=128):
    B, C, H, W = images.shape
    K = 3
    HW = H * W
    wconv, bconv = params["wconv"], params["bconv"]      # (CKp, Cfp) bf16, (1, Cfp) f32
    wemb, bemb = params["wemb_lin"], params["bemb_lin"]  # (Cfp, Ep)  bf16, (1, Ep)  f32
    CKp, Cfp = wconv.shape
    Ep = wemb.shape[1]

    # im2col in plain JAX glue; the heavy matmul runs inside the tiled kernel.
    # TODO(synk): fold im2col into the kernel (shifted row-band views) or use
    #             lax.conv to avoid the 9x HBM expansion at production sizes.
    xp = jnp.pad(images, ((0, 0), (0, 0), (1, 1), (1, 1)))
    cols = [xp[:, :, di:di + H, dj:dj + W] for di in range(K) for dj in range(K)]
    patches = jnp.stack(cols, axis=2)                              # (B, C, K*K, H, W)
    patches = patches.transpose(0, 3, 4, 1, 2).reshape(B, HW, C * K * K)
    patches = jnp.pad(patches, ((0, 0), (0, 0), (0, CKp - C * K * K)))
    patches = patches.astype(jnp.bfloat16)

    # Row tile sized for double-buffered VMEM; raise to 512-1024 for real
    # images and re-derive for v7x's 64 MiB VMEM.
    TR = min(tile_rows, HW)
    if HW % TR or TR % 8:
        TR = HW
    n_r = HW // TR
    inv_hw = 1.0 / HW

    def kernel(p_ref, wc_ref, bc_ref, we_ref, be_ref, out_ref, pooled_ref):
        r = pl.program_id(1)

        @pl.when(r == 0)
        def _init():
            pooled_ref[...] = jnp.zeros_like(pooled_ref)

        conv = jnp.dot(p_ref[0], wc_ref[...],
                       preferred_element_type=jnp.float32) + bc_ref[...]
        feat = jnp.maximum(conv, 0.0)                              # ReLU, (TR, Cfp)
        # Per-tile partial sum into the pooled accumulator (reduction axis = grid axis).
        pooled_ref[...] += jnp.sum(feat, axis=0, keepdims=True)

        @pl.when(r == n_r - 1)
        def _finalize():
            pooled = pooled_ref[...] * inv_hw                      # (1, Cfp) average pool
            out_ref[0] = (jnp.dot(pooled.astype(jnp.bfloat16), we_ref[...],
                                  preferred_element_type=jnp.float32) + be_ref[...])

    out = pl.pallas_call(
        kernel,
        out_shape=jax.ShapeDtypeStruct((B, 1, Ep), jnp.float32),
        grid=(B, n_r),
        in_specs=[
            pl.BlockSpec((1, TR, CKp), lambda b, r: (b, r, 0)),
            _resident((CKp, Cfp), lambda b, r: (0, 0)),
            _resident((1, Cfp), lambda b, r: (0, 0)),
            _resident((Cfp, Ep), lambda b, r: (0, 0)),
            _resident((1, Ep), lambda b, r: (0, 0)),
        ],
        out_specs=pl.BlockSpec((1, 1, Ep), lambda b, r: (b, 0, 0)),
        scratch_shapes=[pltpu.VMEM((1, Cfp), jnp.float32)],        # pooled accumulator
        compiler_params=pltpu.CompilerParams(
            dimension_semantics=("parallel", "arbitrary"),
            vmem_limit_bytes=_vmem_limit_bytes()),
    )(patches, wconv, bconv, wemb, bemb)
    return out.reshape(B, Ep)


# ----------------------------------------------------------------------------
# Decoder: all LSTM layers + vocab projection fused into one kernel
# ----------------------------------------------------------------------------
def rnn_decoder_fused(x_blocks, params, *, S, BB):
    """x_blocks: (nb, S*BB, Ip) bf16, rows time-major inside a block
    (row = t*BB + b).  Returns (nb, S*BB, Vp) bf16 logits, same row order."""
    wih, whh, bgate = params["wih"], params["whh"], params["bgate"]
    wout, bout = params["wout"], params["bout"]
    L, Ip, G = wih.shape
    Hp = whh.shape[1]
    Vp = wout.shape[1]
    nb, rows, _ = x_blocks.shape
    assert rows == S * BB and BB % 8 == 0

    # Vocab tiled along the lane axis so the logits block + wout slice stay small.
    TILE_V = math.gcd(Vp, 512)
    NV = Vp // TILE_V

    def kernel(x_ref, wih_ref, whh_ref, bg_ref, wo_ref, bo_ref,
               out_ref, xproj_ref, act_ref):
        j = pl.program_id(1)

        # The LSTM stack runs once per batch block (first vocab tile only);
        # its hidden states persist in the bf16 act scratch across vocab tiles.
        @pl.when(j == 0)
        def _recurrence():
            for l in range(L):               # static layer loop, weights VMEM-resident
                xin = x_ref[0] if l == 0 else act_ref[...]
                # Hoisted input projection for all timesteps + fused (b_ih + b_hh).
                xproj_ref[...] = (jnp.dot(xin, wih_ref[l],
                                          preferred_element_type=jnp.float32)
                                  + bg_ref[l])

                def step(t, carry):
                    h, c = carry             # h bf16, c f32
                    r0 = pl.multiple_of(t * BB, BB)
                    # W_hh stays stationary: feed the ref slice to the MXU each step.
                    gates = (xproj_ref[pl.ds(r0, BB), :]
                             + jnp.dot(h, whh_ref[l],
                                       preferred_element_type=jnp.float32))
                    # PyTorch gate order (i, f, g, o); every slice is 128-lane aligned.
                    i_g = _sigmoid(gates[:, 0 * Hp:1 * Hp])
                    f_g = _sigmoid(gates[:, 1 * Hp:2 * Hp])
                    g_g = jnp.tanh(gates[:, 2 * Hp:3 * Hp])
                    o_g = _sigmoid(gates[:, 3 * Hp:4 * Hp])
                    c = f_g * c + i_g * g_g
                    h = (o_g * jnp.tanh(c)).astype(jnp.bfloat16)
                    act_ref[pl.ds(r0, BB), :] = h
                    return h, c

                lax.fori_loop(0, S, step,
                              (jnp.zeros((BB, Hp), jnp.bfloat16),
                               jnp.zeros((BB, Hp), jnp.float32)),
                              unroll=(S <= 16))

        # Vocab-tile projection on the last layer's hidden states (every j).
        out_ref[0] = (jnp.dot(act_ref[...], wo_ref[...],
                              preferred_element_type=jnp.float32)
                      + bo_ref[...]).astype(out_ref.dtype)

    return pl.pallas_call(
        kernel,
        out_shape=jax.ShapeDtypeStruct((nb, rows, Vp), jnp.bfloat16),
        grid=(nb, NV),
        in_specs=[
            pl.BlockSpec((1, rows, Ip), lambda i, j: (i, 0, 0)),
            _resident((L, Ip, G), lambda i, j: (0, 0, 0)),
            _resident((L, Hp, G), lambda i, j: (0, 0, 0)),
            _resident((L, 1, G), lambda i, j: (0, 0, 0)),
            pl.BlockSpec((Hp, TILE_V), lambda i, j: (0, j)),
            pl.BlockSpec((1, TILE_V), lambda i, j: (0, j)),
        ],
        out_specs=pl.BlockSpec((1, rows, TILE_V), lambda i, j: (i, 0, j)),
        scratch_shapes=[
            pltpu.VMEM((rows, G), jnp.float32),     # hoisted gate pre-activations
            pltpu.VMEM((rows, Hp), jnp.bfloat16),   # current layer's hidden states
        ],
        compiler_params=pltpu.CompilerParams(
            dimension_semantics=("parallel", "arbitrary"),
            vmem_limit_bytes=_vmem_limit_bytes()),
    )(x_blocks, wih, whh, bgate, wout, bout)


# ----------------------------------------------------------------------------
# Parameters (lane-padded, bf16 matmul weights) + full forward
# ----------------------------------------------------------------------------
def init_params(key, *, cin, cfeat, embed_size, hidden_size, vocab_size,
                num_layers, k=3):
    CK = cin * k * k
    CKp, Cfp = _ru(CK), _ru(cfeat)
    Ep, Hp, Vp = _ru(embed_size), _ru(hidden_size), _ru(vocab_size)
    # TODO(synk): support unequal padded embed/hidden sizes (separate layer-0 W_ih).
    assert Ep == Hp, "padded embed and hidden sizes must match for stacked W_ih"

    n_keys = 7 + 4 * num_layers
    keys = iter(jax.random.split(key, n_keys))
    nrm = lambda kk, shape: 0.1 * jax.random.normal(kk, shape, jnp.float32)

    def pad2(a, r, c, dtype):
        return (jnp.zeros((r, c), jnp.float32)
                .at[:a.shape[0], :a.shape[1]].set(a).astype(dtype))

    def pad_gates(w, rpad, hsz, hpad, dtype):
        # w: (rows, 4*hsz) in PyTorch gate order (i,f,g,o); place gate g at
        # columns [g*hpad, g*hpad + hsz) so every gate slice is lane-aligned.
        out = jnp.zeros((rpad, 4 * hpad), jnp.float32)
        for g in range(4):
            out = out.at[:w.shape[0], g * hpad:g * hpad + hsz].set(
                w[:, g * hsz:(g + 1) * hsz])
        return out.astype(dtype)

    # encoder (CNN stand-in + embed Linear)
    wconv = nrm(next(keys), (CK, cfeat))
    bconv = nrm(next(keys), (1, cfeat))
    wemb = nrm(next(keys), (cfeat, embed_size))
    bemb = nrm(next(keys), (1, embed_size))
    # decoder
    embed_table = nrm(next(keys), (vocab_size, embed_size))
    wout = nrm(next(keys), (hidden_size, vocab_size))
    bout = nrm(next(keys), (1, vocab_size))

    wih_l, whh_l, bg_l = [], [], []
    for l in range(num_layers):
        in_dim = embed_size if l == 0 else hidden_size
        wih = nrm(next(keys), (in_dim, 4 * hidden_size))   # transposed vs PyTorch
        whh = nrm(next(keys), (hidden_size, 4 * hidden_size))
        bih = nrm(next(keys), (1, 4 * hidden_size))
        bhh = nrm(next(keys), (1, 4 * hidden_size))
        wih_l.append(pad_gates(wih, Ep, hidden_size, Hp, jnp.bfloat16))
        whh_l.append(pad_gates(whh, Hp, hidden_size, Hp, jnp.bfloat16))
        bg_l.append(pad_gates(bih + bhh, 1, hidden_size, Hp, jnp.float32))

    return {
        "wconv": pad2(wconv, CKp, Cfp, jnp.bfloat16),
        "bconv": pad2(bconv, 1, Cfp, jnp.float32),
        "wemb_lin": pad2(wemb, Cfp, Ep, jnp.bfloat16),
        "bemb_lin": pad2(bemb, 1, Ep, jnp.float32),
        "embed_table": pad2(embed_table, vocab_size, Ep, jnp.float32),
        "wih": jnp.stack(wih_l),       # (L, Ep, 4*Hp) bf16, gate-block padded
        "whh": jnp.stack(whh_l),       # (L, Hp, 4*Hp) bf16
        "bgate": jnp.stack(bg_l),      # (L, 1, 4*Hp)  f32  (b_ih + b_hh fused)
        "wout": pad2(wout, Hp, Vp, jnp.bfloat16),
        "bout": pad2(bout, 1, Vp, jnp.float32),
        "vocab_size": vocab_size,
    }


def cnn_to_rnn_forward(params, images, captions):
    # --- CNN_Encoder ---
    features = cnn_encoder(images, params)                       # (B, Ep) f32
    # --- RNN_Decoder ---
    B, T = captions.shape
    S = T + 1
    Ep = features.shape[1]
    emb = params["embed_table"][captions]                        # (B, T, Ep) gather (glue)
    seq = jnp.concatenate([features[:, None, :], emb], axis=1)   # (B, S, Ep)

    # Pad the batch to a sublane multiple (all pl.ds offsets 8-aligned, fills
    # MXU rows) and pick rows-per-block: >=128 rows per recurrent matmul and
    # nb >= 2 blocks to shard across v7x's two TensorCores when B allows.
    Bp = -(-B // 8) * 8
    if Bp >= 256 and Bp % 128 == 0:
        BB = 128
    else:
        BB = Bp
    nb = Bp // BB
    seq = jnp.pad(seq, ((0, Bp - B), (0, 0), (0, 0)))

    # Time-major rows inside a block (row = t*BB + b) so each timestep is a
    # contiguous, 8-aligned sublane slice inside the kernel.
    x_blocks = (seq.reshape(nb, BB, S, Ep)
                   .transpose(0, 2, 1, 3)
                   .reshape(nb, S * BB, Ep)
                   .astype(jnp.bfloat16))

    logits_blocks = rnn_decoder_fused(x_blocks, params, S=S, BB=BB)  # (nb, S*BB, Vp) bf16
    Vp = logits_blocks.shape[-1]
    logits = (logits_blocks.reshape(nb, S, BB, Vp)
                           .transpose(0, 2, 1, 3)
                           .reshape(Bp, S, Vp))
    return logits[:B, :, :params["vocab_size"]]                  # (B, T+1, vocab) bf16


# ----------------------------------------------------------------------------
# Pure-JAX f32 reference (same padded weights) for a tolerance check
# ----------------------------------------------------------------------------
def reference_forward(params, images, captions):
    f32 = jnp.float32
    B, C, H, W = images.shape
    K = 3
    HW = H * W
    wconv = params["wconv"].astype(f32)
    wemb = params["wemb_lin"].astype(f32)
    CK = C * K * K
    xp = jnp.pad(images, ((0, 0), (0, 0), (1, 1), (1, 1)))
    cols = [xp[:, :, di:di + H, dj:dj + W] for di in range(K) for dj in range(K)]
    patches = (jnp.stack(cols, axis=2).transpose(0, 3, 4, 1, 2)
               .reshape(B, HW, CK))
    patches = jnp.pad(patches, ((0, 0), (0, 0), (0, wconv.shape[0] - CK)))
    feat = jnp.maximum(patches @ wconv + params["bconv"], 0.0)
    pooled = feat.mean(axis=1)
    features = pooled @ wemb + params["bemb_lin"]                # (B, Ep)

    emb = params["embed_table"][captions]
    x = jnp.concatenate([features[:, None, :], emb], axis=1)    # (B, S, Ep)
    wih = params["wih"].astype(f32)
    whh = params["whh"].astype(f32)
    bg = params["bgate"]
    L = wih.shape[0]
    Hp = whh.shape[1]
    S = x.shape[1]
    for l in range(L):
        h = jnp.zeros((B, Hp), f32)
        c = jnp.zeros((B, Hp), f32)
        hs = []
        for t in range(S):
            gates = x[:, t, :] @ wih[l] + bg[l] + h @ whh[l]
            i_g = jax.nn.sigmoid(gates[:, 0 * Hp:1 * Hp])
            f_g = jax.nn.sigmoid(gates[:, 1 * Hp:2 * Hp])
            g_g = jnp.tanh(gates[:, 2 * Hp:3 * Hp])
            o_g = jax.nn.sigmoid(gates[:, 3 * Hp:4 * Hp])
            c = f_g * c + i_g * g_g
            h = o_g * jnp.tanh(c)
            hs.append(h)
        x = jnp.stack(hs, axis=1)                                # (B, S, Hp)
    logits = x @ params["wout"].astype(f32) + params["bout"]
    return logits[:, :, :params["vocab_size"]]


if __name__ == "__main__":
    # Small, module-consistent shapes.
    B, CIN, IMG = 2, 3, 16
    CFEAT = 32          # stand-in for resnet.fc.in_features
    EMBED = 32
    HIDDEN = 32
    VOCAB = 1000        # > 512 so the vocab-tiled grid axis is exercised
    NUM_LAYERS = 2
    T = 8               # caption length; output sequence length is T + 1

    key = jax.random.PRNGKey(0)
    k_img, k_cap, k_par = jax.random.split(key, 3)
    images = jax.random.normal(k_img, (B, CIN, IMG, IMG), jnp.float32)
    captions = jax.random.randint(k_cap, (B, T), 0, VOCAB, jnp.int32)

    params = init_params(k_par, cin=CIN, cfeat=CFEAT, embed_size=EMBED,
                         hidden_size=HIDDEN, vocab_size=VOCAB,
                         num_layers=NUM_LAYERS)

    logits = cnn_to_rnn_forward(params, images, captions)
    logits = jax.block_until_ready(logits)

    assert logits.shape == (B, T + 1, VOCAB), logits.shape
    assert bool(jnp.all(jnp.isfinite(logits.astype(jnp.float32))))

    # Validate against a pure-JAX f32 reference (bf16 matmuls + approx
    # reciprocal sigmoid => loose tolerance).
    ref = reference_forward(params, images, captions)
    err = float(jnp.max(jnp.abs(logits.astype(jnp.float32) - ref)))
    assert err < 3e-2, f"max |pallas - reference| = {err}"

    print("KERNEL_OK")
</pallas_src>

<mosaic_0001>
module attributes {stable_mosaic.version = 11 : i64} {
  func.func @kernel(%arg0: i32, %arg1: i32, %arg2: memref<1x128x128xbf16, #tpu.memory_space<vmem>>, %arg3: memref<128x128xbf16, #tpu.memory_space<vmem>>, %arg4: memref<1x128xf32, #tpu.memory_space<vmem>>, %arg5: memref<128x128xbf16, #tpu.memory_space<vmem>>, %arg6: memref<1x128xf32, #tpu.memory_space<vmem>>, %arg7: memref<1x1x128xf32, #tpu.memory_space<vmem>>, %arg8: memref<1x128xf32, #tpu.memory_space<vmem>>) attributes {dimension_semantics = [#tpu.dimension_semantics<parallel>, #tpu.dimension_semantics<arbitrary>], iteration_bounds = array<i64: 2, 2>, scalar_prefetch = 0 : i64, scratch_operands = 1 : i64, tpu.core_type = #tpu.core_type<tc>, window_params = [{transform_indices = @transform_0, window_bounds = array<i64: 1, 128, 128>}, {pipeline_mode = #tpu.pipeline_mode<synchronous>, transform_indices = @transform_1, window_bounds = array<i64: 128, 128>}, {pipeline_mode = #tpu.pipeline_mode<synchronous>, transform_indices = @transform_2, window_bounds = array<i64: 1, 128>}, {pipeline_mode = #tpu.pipeline_mode<synchronous>, transform_indices = @transform_3, window_bounds = array<i64: 128, 128>}, {pipeline_mode = #tpu.pipeline_mode<synchronous>, transform_indices = @transform_4, window_bounds = array<i64: 1, 128>}, {transform_indices = @transform_5, window_bounds = array<i64: 1, 1, 128>}]} {
    %c0_i32 = arith.constant 0 : i32
    %0 = arith.cmpi eq, %arg1, %c0_i32 : i32
    %1 = arith.extui %0 : i1 to i32
    %c0_i32_0 = arith.constant 0 : i32
    %2 = arith.cmpi ne, %1, %c0_i32_0 : i32
    scf.if %2 {
      %cst_14 = arith.constant 0.000000e+00 : f32
      %20 = vector.broadcast %cst_14 : f32 to vector<1x128xf32>
      %c0_15 = arith.constant 0 : index
      %c0_16 = arith.constant 0 : index
      %21 = vector.load %arg8[%c0_15, %c0_16] : memref<1x128xf32, #tpu.memory_space<vmem>>, vector<1x128xf32>
      tpu.vector_store %arg8[%c0_15, %c0_16], %20 {strides = array<i32>} : memref<1x128xf32, #tpu.memory_space<vmem>>, vector<1x128xf32>,
    } else {
    }
    %c0 = arith.constant 0 : index
    %c0_1 = arith.constant 0 : index
    %c0_2 = arith.constant 0 : index
    %3 = vector.load %arg2[%c0, %c0_1, %c0_2] : memref<1x128x128xbf16, #tpu.memory_space<vmem>>, vector<1x128x128xbf16>
    %4 = vector.shape_cast %3 : vector<1x128x128xbf16> to vector<128x128xbf16>
    %c0_3 = arith.constant 0 : index
    %c0_4 = arith.constant 0 : index
    %5 = vector.load %arg3[%c0_3, %c0_4] : memref<128x128xbf16, #tpu.memory_space<vmem>>, vector<128x128xbf16>
    %cst = arith.constant dense<0.000000e+00> : vector<128x128xf32>
    %6 = tpu.matmul %4, %5, %cst {dimension_numbers = #tpu.dot_dimension_numbers<[1], [0], [0], [1], [0, 0, 1, 1], [], []>} : vector<128x128xbf16>, vector<128x128xbf16>, vector<128x128xf32> -> vector<128x128xf32>
    %c0_5 = arith.constant 0 : index
    %c0_6 = arith.constant 0 : index
    %7 = vector.load %arg4[%c0_5, %c0_6] : memref<1x128xf32, #tpu.memory_space<vmem>>, vector<1x128xf32>
    %8 = vector.broadcast %7 : vector<1x128xf32> to vector<128x128xf32>
    %9 = arith.addf %6, %8 : vector<128x128xf32>
    %cst_7 = arith.constant 0.000000e+00 : f32
    %10 = vector.broadcast %cst_7 : f32 to vector<128x128xf32>
    %11 = arith.maximumf %9, %10 : vector<128x128xf32>
    %c0_8 = arith.constant 0 : index
    %c0_9 = arith.constant 0 : index
    %12 = vector.load %arg8[%c0_8, %c0_9] : memref<1x128xf32, #tpu.memory_space<vmem>>, vector<1x128xf32>
    %cst_10 = arith.constant dense<0.000000e+00> : vector<128xf32>
    %13 = vector.multi_reduction <add>, %11, %cst_10 [0] : vector<128x128xf32> to vector<128xf32>
    %14 = vector.shape_cast %13 : vector<128xf32> to vector<1x128xf32>
    %15 = arith.addf %12, %14 : vector<1x128xf32>
    %c0_11 = arith.constant 0 : index
    %c0_12 = arith.constant 0 : index
    %16 = vector.load %arg8[%c0_11, %c0_12] : memref<1x128xf32, #tpu.memory_space<vmem>>, vector<1x128xf32>
    tpu.vector_store %arg8[%c0_11, %c0_12], %15 {strides = array<i32>} : memref<1x128xf32, #tpu.memory_space<vmem>>, vector<1x128xf32>,
    %c1_i32 = arith.constant 1 : i32
    %17 = arith.cmpi eq, %arg1, %c1_i32 : i32
    %18 = arith.extui %17 : i1 to i32
    %c0_i32_13 = arith.constant 0 : i32
    %19 = arith.cmpi ne, %18, %c0_i32_13 : i32
    scf.if %19 {
      %c0_14 = arith.constant 0 : index
      %c0_15 = arith.constant 0 : index
      %20 = vector.load %arg8[%c0_14, %c0_15] : memref<1x128xf32, #tpu.memory_space<vmem>>, vector<1x128xf32>
      %cst_16 = arith.constant 3.906250e-03 : f32
      %21 = vector.broadcast %cst_16 : f32 to vector<1x128xf32>
      %22 = arith.mulf %20, %21 : vector<1x128xf32>
      %23 = arith.truncf %22 : vector<1x128xf32> to vector<1x128xbf16>
      %c0_17 = arith.constant 0 : index
      %c0_18 = arith.constant 0 : index
      %24 = vector.load %arg5[%c0_17, %c0_18] : memref<128x128xbf16, #tpu.memory_space<vmem>>, vector<128x128xbf16>
      %cst_19 = arith.constant dense<0.000000e+00> : vector<1x128xf32>
      %25 = tpu.matmul %23, %24, %cst_19 {dimension_numbers = #tpu.dot_dimension_numbers<[1], [0], [0], [1], [0, 0, 1, 1], [], []>} : vector<1x128xbf16>, vector<128x128xbf16>, vector<1x128xf32> -> vector<1x128xf32>
      %c0_20 = arith.constant 0 : index
      %c0_21 = arith.constant 0 : index
      %26 = vector.load %arg6[%c0_20, %c0_21] : memref<1x128xf32, #tpu.memory_space<vmem>>, vector<1x128xf32>
      %27 = arith.addf %25, %26 : vector<1x128xf32>
      %c0_22 = arith.constant 0 : index
      %c0_23 = arith.constant 0 : index
      %c0_24 = arith.constant 0 : index
      %28 = vector.load %arg7[%c0_22, %c0_23, %c0_24] : memref<1x1x128xf32, #tpu.memory_space<vmem>>, vector<1x1x128xf32>
      %29 = vector.shape_cast %28 : vector<1x1x128xf32> to vector<1x128xf32>
      %30 = vector.shape_cast %27 : vector<1x128xf32> to vector<1x1x128xf32>
      tpu.vector_store %arg7[%c0_22, %c0_23, %c0_24], %30 {strides = array<i32>} : memref<1x1x128xf32, #tpu.memory_space<vmem>>, vector<1x1x128xf32>,
    } else {
    }
    return
  }
  func.func @transform_0(%arg0: i32, %arg1: i32) -> (i32, i32, i32) {
    %c0_i32 = arith.constant 0 : i32
    %c0_i32_0 = arith.constant 0 : i32
    return %arg0, %arg1, %c0_i32 : i32, i32, i32
  }
  func.func @transform_1(%arg0: i32, %arg1: i32) -> (i32, i32) {
    %c0_i32 = arith.constant 0 : i32
    %c0_i32_0 = arith.constant 0 : i32
    %c0_i32_1 = arith.constant 0 : i32
    return %c0_i32, %c0_i32_0 : i32, i32
  }
  func.func @transform_2(%arg0: i32, %arg1: i32) -> (i32, i32) {
    %c0_i32 = arith.constant 0 : i32
    %c0_i32_0 = arith.constant 0 : i32
    %c0_i32_1 = arith.constant 0 : i32
    return %c0_i32, %c0_i32_0 : i32, i32
  }
  func.func @transform_3(%arg0: i32, %arg1: i32) -> (i32, i32) {
    %c0_i32 = arith.constant 0 : i32
    %c0_i32_0 = arith.constant 0 : i32
    %c0_i32_1 = arith.constant 0 : i32
    return %c0_i32, %c0_i32_0 : i32, i32
  }
  func.func @transform_4(%arg0: i32, %arg1: i32) -> (i32, i32) {
    %c0_i32 = arith.constant 0 : i32
    %c0_i32_0 = arith.constant 0 : i32
    %c0_i32_1 = arith.constant 0 : i32
    return %c0_i32, %c0_i32_0 : i32, i32
  }
  func.func @transform_5(%arg0: i32, %arg1: i32) -> (i32, i32, i32) {
    %c0_i32 = arith.constant 0 : i32
    %c0_i32_0 = arith.constant 0 : i32
    %c0_i32_1 = arith.constant 0 : i32
    return %arg0, %c0_i32, %c0_i32_0 : i32, i32, i32
  }
}

</mosaic_0001>

<bundles_post_ra>
// kernel: tpu_custom_call.1
= control target key start
LH: loop header
LB: loop body
LE: loop exit
PB: predicated region body
PF: predicated region fallthrough
CT: control target
= control target key end

     0   :  { %s1582_s0 = inlined_call_operand.hbm [shape: bf16[2,256,128], index: 0, kind: input, shape index: {}]   ;;  %s1583_s1 = inlined_call_operand.hbm [shape: bf16[128,128], index: 1, kind: input, shape index: {}]   ;;  %s1584_s2 = inlined_call_operand.vmem [shape: f32[1,128], index: 2, kind: input, shape index: {}]   ;;  %s1585_s3 = inlined_call_operand.hbm [shape: bf16[128,128], index: 3, kind: input, shape index: {}]   ;;  %s1586_s4 = inlined_call_operand.vmem [shape: f32[1,128], index: 4, kind: input, shape index: {}]   ;;  %s1587_s5 = inlined_call_operand.hbm [shape: f32[2,1,128], index: 5, kind: output, shape index: {}]  }
   0x1   :  { %1598 = sst [smem:[#allocation19_spill]] %s1583_s1 }
   0x2   :  { %1599 = sst [smem:[#allocation20_spill]] %s1584_s2 }
   0x3   :  { %1600 = sst [smem:[#allocation21_spill]] %s1585_s3 }
   0x4   :  { %1601 = sst [smem:[#allocation22_spill]] %s1586_s4 }
   0x5   :  { %1602 = sst [smem:[#allocation23_spill]] %s1587_s5 }
   0x6   :  { %10 = vsyncpa [#allocation4], 0 }
   0x7   :  { %12 = vsyncpa [#allocation4 + $0x1], 0 }
   0x8   :  { %13 = vsyncpa [#allocation7], 0 }
   0x9   :  { %14 = vsyncpa [#allocation5], 0 }
   0xa   :  { %16 = vsyncpa [#allocation5 + $0x1], 0  ;;  %s1325_s18 = smov 0   ;;  %s1327_s19 = smov 0  }
   0xb   :  { %s1329_s20 = smov 0   ;;  %s1331_s21 = smov 0  }
   0xc   :  { %s1333_s22 = smov 0   ;;  %s1335_s23 = smov 0  }
   0xd   :  { %s1337_s24 = smov 0   ;;  %s1339_s25 = smov 0  }
   0xe   :  { %s1341_s26 = smov 0   ;;  %s1343_s27 = smov 0  }
   0xf   :  { %s1345_s28 = smov 0  }
  0x10 LB: > { %1603 = sst [smem:[#allocation13_spill]] %s1244_s18  ;;  %s791_s29 = sadd.s32 4294967295, %s1284_s28   ;;  %s1284_s28 = sphi %s1345_s28, %s22_s28   ;;  %s1280_s27 = sphi %s1343_s27, %s1640_s27   ;;  %s1276_s26 = sphi %s1341_s26, %s1632_s26   ;;  %s1272_s25 = sphi %s1339_s25, %s1639_s25   ;;  %s1268_s24 = sphi %s1337_s24, %s1631_s24   ;;  %s1264_s23 = sphi %s1335_s23, %s1638_s23   ;;  %s1260_s22 = sphi %s1333_s22, %s1637_s22   ;;  %s1256_s21 = sphi %s1331_s21, %s1636_s21   ;;  %s1252_s20 = sphi %s1329_s20, %s1635_s20   ;;  %s1248_s19 = sphi %s1327_s19, %s1634_s19   ;;  %s1244_s18 = sphi %s1325_s18, %s1633_s18  }
  0x11   : > { %1604 = sst [smem:[#allocation14_spill]] %s1272_s25  ;;  %s792_s30 = sadd.s32 4294967294, %s1284_s28  }
  0x12   : > { %1605 = sst [smem:[#allocation15_spill]] %s1276_s26  ;;  %p56_p0 = scmp.ne.s32.totalorder %s1260_s22, %s1256_s21 }
  0x13   : > { %p1381_p1 = scmp.eq.s32.totalorder %s791_s29, 0  ;;  %p163_p2 = scmp.ne.s32.totalorder %s1252_s20, %s1248_s19 }
  0x14   : > { %p164_p4 = scmp.eq.s32.totalorder %s791_s29, 3  ;;  %p169_p5 = scmp.ne.s32.totalorder %s1248_s19, %s1244_s18 }
  0x15   : > { %p1390_p3 = por %p1381_p1, %p56_p0  ;;  %p170_p6 = scmp.eq.s32.totalorder %s792_s30, 3 }
  0x16   : > { %p1396_p7 = por %p164_p4, %p163_p2  ;;  %p793_p8 = scmp.ge.s32.totalorder %s1284_s28, 1 }
  0x17   : > { %p1401_p9 = por %p170_p6, %p169_p5  ;;  %p177_p10 = scmp.lt.s32.totalorder %s1284_s28, 5 }
  0x18   : > { %s1608_s9 = scalar_select %p1396_p7, 1, 0 }
  0x19   : > { %s1610_s10 = scalar_select %p1401_p9, 1, 0 }
  0x1a   : > { %1609 = sst [smem:[#allocation16_spill]] %s1608_s9  ;;  %p1406_p11 = pnand %p793_p8, %p177_p10 }
  0x1b   : > { %1611 = sst [smem:[#allocation17_spill]] %s1610_s10  ;;  %s1286_s12 = smov [#allocation6]  }
  0x1c   : > { %s189_s13 = sshll.u32 %s1286_s12, 4  ;;  %p940_p12 = pneg %p1406_p11  ;;  %s190_s13 = int_to_ptr.vmem [resolvable:$true] %s189_s13 }
  0x1d   : > { %s1287_s15 = smov [#allocation8]   ;;  %s1091_s17 = scalar_lea.vmem %s190_s13, 1024 }
  0x1e   : > { %p1414_p13 = pnand %p940_p12, %p1381_p1  ;;  %s205_s16 = sshll.u32 %s1287_s15, 4  ;;  %s206_s16 = int_to_ptr.vmem [resolvable:$true] %s205_s16 }
  0x1f   : > { %p1092_p2 = scmp.ne.s32.totalorder %s190_s13, %s1091_s17  ;;  %p1099_p6 = scmp.lt.s32.totalorder %s190_s13, %s190_s13 }
  0x20   : > { %p1082_p0 = pneg %p1414_p13  ;;  %p1100_p8 = scmp.lt.s32.totalorder %s1091_s17, %s1091_s17 }
  0x22   : > { %p1094_p4 = pnand %p1092_p2, %p1082_p0  ;;  %p1101_p10 = por %p1100_p8, %p1099_p6 }
  0x24   : > { %p1095_p5 = pneg %p1094_p4 }
  0x26   : > { %p1102_p12 = pnand %p1101_p10, %p1095_p5 }
  0x28   : > { %1105 = shalt.err (!%p1102_p12)
}
  0x29   : > { %s1588_s21 = smov 64   ;;  %s1589_s29 = smov 4  }
  0x2a   : > { %s1614_s1 = sld [smem:[#allocation19_spill]]  ;;  %s1117_s15 = scalar_lea.vmem %s206_s16, 1024 }
  0x2b   : > { %p1118_p2 = scmp.ne.s32.totalorder %s206_s16, %s1117_s15  ;;  %p1125_p5 = scmp.lt.s32.totalorder %s206_s16, %s206_s16 }
  0x2c   : > { %p1126_p8 = scmp.lt.s32.totalorder %s1117_s15, %s1117_s15 }
  0x2d   : > { %p1120_p4 = pnand %p1118_p2, %p1082_p0 }
  0x2e   : > { %p1127_p10 = por %p1126_p8, %p1125_p5 }
  0x2f   : > { %p1121_p6 = pneg %p1120_p4 }
  0x30   : > { %943 = dma.hbm_to_vmem [thread:$0]  (!%p1414_p13), %s1614_s1, 1024, %s190_s13, [#allocation7], %s1588_s21, %s1588_s21, %s1589_s29  }
  0x31   : > { %p1128_p12 = pnand %p1127_p10, %p1121_p6 }
  0x33   : > { %1131 = shalt.err (!%p1128_p12)
}
  0x34   : > { %s1615_s3 = sld [smem:[#allocation21_spill]]  ;;  %s31_s13 = sadd.s32 1, %s1276_s26 }
  0x35   : > { %s34_s14 = sadd.s32 1, %s1280_s27  ;;  %p32_p0 = scmp.ge.s32.totalorder %s31_s13, 2 }
  0x36   : > { %s43_s30 = sadd.s32 1, %s1264_s23  ;;  %p50_p2 = scmp.ne.s32.totalorder %s1264_s23, %s1260_s22 }
  0x37   : > { %p51_p4 = scmp.eq.s32.totalorder %s1284_s28, 0  ;;  %s1642_s13 = smov (%p32_p0, %s31_s13), 0 }
  0x38   : > { %1616 = sst [smem:[#allocation18_spill]] %s1642_s13  ;;  %s1644_s14 = smov (!%p32_p0, %s34_s14), %s1280_s27 }
  0x39   : > { %s39_s7 = ssub.s32 %s1276_s26, %s1642_s13  ;;  %p1453_p6 = por %p51_p4, %p50_p2 }
  0x3a   : > { %946 = dma.hbm_to_vmem [thread:$0]  (!%p1414_p13), %s1615_s3, 1024, %s206_s16, [#allocation7], %s1588_s21, %s1588_s21, %s1589_s29  }
  0x3b   : > { %p36_p13 = scmp.ge.s32.totalorder %s1644_s14, 2  ;;  %p957_p5 = scmp.lt.s32.totalorder %s1284_s28, 4 }
  0x3c   : > { %s222_s16 = sand.u32 1, %s1264_s23   ;;  %s798_s15 = sshll.u32 %s1276_s26, 4 }
  0x3d   : > { %s1646_s14 = smov (%p36_p13, %s1644_s14), 0  ;;  %s797_s17 = sshll.u32 %s222_s16, 6 }
  0x3e   : > { %s38_s21 = ssub.s32 %s1280_s27, %s1646_s14  ;;  %s799_s1 = sshll.u32 %s1280_s27, 5 }
  0x3f   : > { %s40_s29 = sor.u32 %s39_s7, %s38_s21  ;;  %p151_p8 = scmp.eq.s32.totalorder %s38_s21, 0 }
  0x40   : > { %p41_p10 = scmp.eq.s32.totalorder %s40_s29, 0  ;;  %s1618_s3 = sadd.s32 1, %s1252_s20 }
  0x41   : > { %s1468_s13 = scalar_select %p151_p8, %s1252_s20, %s1618_s3  }
  0x42   : > { %s1471_s10 = scalar_select %p41_p10, %s1264_s23, %s43_s30  }
  0x43   : > { %s232_s18 = sadd.s32 %s799_s1, %s798_s15  ;;  %s226_s5 = scalar_lea.vmem [#allocation3], %s797_s17 }
  0x44   : > { %s235_s9 = sshll.u32 %s226_s5, 4  ;;  %s800_s26 = sshll.u32 %s232_s18, 6  ;;  %s236_s9 = int_to_ptr.vmem [resolvable:$true] %s235_s9 }
  0x45   : > { %s234_s2 = scalar_lea.hbm %s1582_s0, %s800_s26  ;;  %p1480_p12 = pnand %p957_p5, %p1453_p6 }
  0x46   : > { %s223_s3 = scalar_lea.sflag [#allocation4], %s222_s16  ;;  %s1145_s29 = scalar_lea.vmem %s236_s9, 1024 }
  0x47   : > { %p1134_p0 = pneg %p1480_p12  ;;  %p1146_p2 = scmp.ne.s32.totalorder %s236_s9, %s1145_s29 }
  0x48   : > { %s1290_s1 = smov [#allocation3]  }
  0x49   : > { %p1148_p4 = pnand %p1146_p2, %p1134_p0  ;;  %s1150_s5 = sshll.u32 %s1290_s1, 4  ;;  %s1151_s5 = int_to_ptr.vmem [resolvable:$false] %s1150_s5 }
  0x4a   : > { %s1152_s18 = scalar_lea.vmem %s1151_s5, 2048  ;;  %p1153_p8 = scmp.lt.s32.totalorder %s236_s9, %s1151_s5 }
  0x4b   : > { %p1149_p13 = pneg %p1148_p4  ;;  %p1154_p10 = scmp.lt.s32.totalorder %s1152_s18, %s1145_s29 }
  0x4d   : > { %p1155_p9 = por %p1154_p10, %p1153_p8 }
  0x4f   : > { %p1156_p7 = pnand %p1155_p9, %p1149_p13 }
  0x51   : > { %1159 = shalt.err (!%p1156_p7)
}
  0x52   : > { %s1620_s4 = smov 4   ;;  %s1621_s25 = smov 64  }
  0x53   : > { %950 = dma.hbm_to_vmem [thread:$0]  (!%p1480_p12), %s234_s2, 1024, %s236_s9, %s223_s3, %s1621_s25, %s1621_s25, %s1620_s4  }
  0x54   : > { %247 = sbr.rel (%p1406_p11) target bundleno = 641 (0x281), region = 40  ;;  %s249_s26 = sand.u32 (!%p1406_p11), 1, %s1260_s22  }
  0x55   : > { %s802_s30 = sshll.u32 (!%p1406_p11), %s249_s26, 6  ;;  %s250_s7 = scalar_lea.sflag (!%p1406_p11), [#allocation4], %s249_s26 }
  0x56   : > { %s1494_s12 = scalar_lea.vmem (!%p1406_p11), [#allocation3], %s802_s30 }
  0x59   : > { %1231 = dma.done.wait (%p1390_p3), %s250_s7, 1024  }
  0x5a   : > { %1233 = vsyncadd (%p1390_p3), %s250_s7, 4294966272 }
  0x5b   : > { %1235 = dma.done.wait (%p1381_p1), [#allocation7], 2048  }
  0x5c   : > { %1237 = vsyncadd (%p1381_p1), [#allocation7], 4294965248  ;;  %s285_s2 = sand.u32 1, %s1248_s19   ;;  %p805_p7 = scmp.ne.s32.totalorder %s1268_s24, 0 }
  0x5d   : > { %s1507_s9 = scalar_lea.vmem [#allocation9], %s285_s2 }
  0x5e   : > { %292 = sbr.rel (%p805_p7) target bundleno = 101 (0x65), region = 56 }
  0x63   : > { %v1291_v0 = vmov 0.0  }
  0x64   : > { %293 = vst [vmem:[#allocation2] sm:$0x1] %v1291_v0 }
  0x65 PF: > { %v1056_v1 = vld [vmem:[#allocation6 + $0x38] sm:$0xff]   ;;  %v1057_v2 = vld [vmem:[#allocation6 + $0x30] sm:$0xff]   ;;  %v1058_v3 = vld [vmem:[#allocation6 + $0x28] sm:$0xff]   ;;  %s1622_s11 = sld [smem:[#allocation20_spill]]  ;;  %p823_p1 = scmp.ne.s32.totalorder %s1268_s24, 1 }
  0x66   : > { %860 = vmatprep.subr.bf16.mxu0 %v1056_v1  ;;  %912 = vmatprep.subr.bf16.mxu1 %v1056_v1  ;;  %v1059_v4 = vld [vmem:[#allocation6 + $0x20] sm:$0xff]   ;;  %v1060_v6 = vld [vmem:[#allocation6 + $0x18] sm:$0xff]   ;;  %v1061_v8 = vld [vmem:[#allocation6 + $0x10] sm:$0xff]   ;;  %s1623_s15 = sld [smem:[#allocation22_spill]] (!%p823_p1) }
  0x67   : > { %861 = vmatpush3.bf16.msra.mxu0 %v1056_v1  ;;  %920 = vmatpush3.bf16.msra.mxu1 %v1056_v1  ;;  %v1064_v5 = vld [vmem:[%s1494_s12] sm:$0xff]   ;;  %v1062_v9 = vld [vmem:[#allocation6 + $0x8] sm:$0xff]   ;;  %v1066_v13 = vld [vmem:[%s1494_s12 + $0x10] sm:$0xff]  }
  0x68   : > { %862 = vmatprep.subr.bf16.mxu0 %v1057_v2  ;;  %913 = vmatprep.subr.bf16.mxu1 %v1057_v2  ;;  %v1068_v7 = vld [vmem:[%s1494_s12 + $0x20] sm:$0xff]   ;;  %v1065_v11 = vld [vmem:[%s1494_s12 + $0x8] sm:$0xff]   ;;  %v1070_v14 = vld [vmem:[%s1494_s12 + $0x30] sm:$0xff]  }
  0x69   : > { %876 = vmatprep.mubr.bf16.mxu0 %v1064_v5  ;;  %884 = vmatprep.mubr.bf16.mxu1 %v1068_v7  ;;  %v1063_v10 = vld [vmem:[#allocation6] sm:$0xff]   ;;  %v1069_v12 = vld [vmem:[%s1494_s12 + $0x28] sm:$0xff]   ;;  %v1067_v15 = vld [vmem:[%s1494_s12 + $0x18] sm:$0xff]  }
  0x6a   : > { %v1071_v16 = vld [vmem:[%s1494_s12 + $0x38] sm:$0xff]  }
  0x6b   : > { %863 = vmatpush3.bf16.msra.mxu0 %v1057_v2  ;;  %921 = vmatpush3.bf16.msra.mxu1 %v1057_v2  ;;  %v806_v21 = vld [vmem:[%s1622_s11] ss:$0 sm:$0xff] }
  0x6c   : > { %864 = vmatprep.subr.bf16.mxu0 %v1058_v3  ;;  %914 = vmatprep.subr.bf16.mxu1 %v1058_v3 }
  0x6f   : > { %865 = vmatpush3.bf16.msra.mxu0 %v1058_v3  ;;  %922 = vmatpush3.bf16.msra.mxu1 %v1058_v3 }
  0x70   : > { %866 = vmatprep.subr.bf16.mxu0 %v1059_v4  ;;  %915 = vmatprep.subr.bf16.mxu1 %v1059_v4 }
  0x73   : > { %867 = vmatpush3.bf16.msra.mxu0 %v1059_v4  ;;  %923 = vmatpush3.bf16.msra.mxu1 %v1059_v4 }
  0x74   : > { %868 = vmatprep.subr.bf16.mxu0 %v1060_v6  ;;  %916 = vmatprep.subr.bf16.mxu1 %v1060_v6 }
  0x77   : > { %869 = vmatpush3.bf16.msra.mxu0 %v1060_v6  ;;  %924 = vmatpush3.bf16.msra.mxu1 %v1060_v6 }
  0x78   : > { %870 = vmatprep.subr.bf16.mxu0 %v1061_v8  ;;  %917 = vmatprep.subr.bf16.mxu1 %v1061_v8 }
  0x7b   : > { %871 = vmatpush3.bf16.msra.mxu0 %v1061_v8  ;;  %925 = vmatpush3.bf16.msra.mxu1 %v1061_v8 }
  0x7c   : > { %872 = vmatprep.subr.bf16.mxu0 %v1062_v9  ;;  %918 = vmatprep.subr.bf16.mxu1 %v1062_v9 }
  0x7f   : > { %873 = vmatpush3.bf16.msra.mxu0 %v1062_v9  ;;  %926 = vmatpush3.bf16.msra.mxu1 %v1062_v9 }
  0x80   : > { %874 = vmatprep.subr.bf16.mxu0 %v1063_v10  ;;  %919 = vmatprep.subr.bf16.mxu1 %v1063_v10 }
  0x83   : > { %875 = vmatpush3.bf16.msra.mxu0 %v1063_v10  ;;  %927 = vmatpush3.bf16.msra.mxu1 %v1063_v10 }
  0x86   : > { %877 = vmatmul.mubr.bf16.vlgmr.msra.gmra.mxu0 %v1065_v11  ;;  %885 = vmatmul.mubr.bf16.vlgmr.msra.gmra.mxu1 %v1069_v12 }
  0x87   : > { %880 = vmatprep.mubr.bf16.mxu0 %v1066_v13  ;;  %888 = vmatprep.mubr.bf16.mxu1 %v1070_v14 }
  0x8e   : > { %881 = vmatmul.mubr.bf16.gmra.mxu0 %v1067_v15  ;;  %889 = vmatmul.mubr.bf16.gmra.mxu1 %v1071_v16 }
 0x146   : > { %v878_v17 = vpop.f32.mrf.mxu0  ;;  %v886_v18 = vpop.f32.mrf.mxu1 }
 0x147   : > { %v472_v26 = vadd.f32 %v878_v17, %v806_v21  ;;  %v504_v57 = vadd.f32 %v886_v18, %v806_v21 }
 0x148   : > { %v463_v19 = vpop.f32.mrf.mxu0  ;;  %v495_v20 = vpop.f32.mrf.mxu1 }
 0x149   : > { %v464_v23 = vadd.f32 %v806_v21, %v463_v19  ;;  %v528_v34 = vmax.f32 %v472_v26, 0.0  ;;  %v496_v51 = vadd.f32 %v806_v21, %v495_v20  ;;  %v536_v0 = vmax.f32 %v504_v57, 0.0 }
 0x14a   : > { %v879_v22 = vpop.f32.mrf.mxu0  ;;  %v887_v25 = vpop.f32.mrf.mxu1 }
 0x14b   : > { %v526_v29 = vmax.f32 %v464_v23, 0.0  ;;  %v475_v30 = vadd.f32 %v879_v22, %v806_v21  ;;  %v534_v58 = vmax.f32 %v496_v51, 0.0  ;;  %v507_v60 = vadd.f32 %v887_v25, %v806_v21  ;;  %v542_v23 = vld [vmem:[#allocation2] sm:$0x1] }
 0x14c   : > { %v466_v24 = vpop.f32.mrf.mxu0  ;;  %v498_v33 = vpop.f32.mrf.mxu1 }
 0x14d   : > { %v467_v27 = vadd.f32 %v806_v21, %v466_v24  ;;  %v529_v38 = vmax.f32 %v475_v30, 0.0  ;;  %v499_v55 = vadd.f32 %v806_v21, %v498_v33  ;;  %v537_v3 = vmax.f32 %v507_v60, 0.0 }
 0x14e   : > { %v882_v28 = vpop.f32.mrf.mxu0  ;;  %v890_v41 = vpop.f32.mrf.mxu1 }
 0x14f   : > { %v527_v31 = vmax.f32 %v467_v27, 0.0  ;;  %v488_v42 = vadd.f32 %v882_v28, %v806_v21  ;;  %v535_v61 = vmax.f32 %v499_v55, 0.0  ;;  %v520_v6 = vadd.f32 %v890_v41, %v806_v21 }
 0x150   : > { %v479_v32 = vpop.f32.mrf.mxu0  ;;  %v511_v49 = vpop.f32.mrf.mxu1 }
 0x151   : > { %v543_v35 = vadd.f32 %v527_v31, %v526_v29  ;;  %v480_v36 = vadd.f32 %v806_v21, %v479_v32  ;;  %v532_v50 = vmax.f32 %v488_v42, 0.0  ;;  %v512_v2 = vadd.f32 %v806_v21, %v511_v49 }
 0x152   : > { %v883_v37 = vpop.f32.mrf.mxu0  ;;  %v891_v56 = vpop.f32.mrf.mxu1  ;;  %v540_v12 = vmax.f32 %v520_v6, 0.0 }
 0x153   : > { %v544_v39 = vadd.f32 %v543_v35, %v528_v34  ;;  %v530_v43 = vmax.f32 %v480_v36, 0.0  ;;  %v491_v47 = vadd.f32 %v883_v37, %v806_v21  ;;  %v538_v7 = vmax.f32 %v512_v2, 0.0 }
 0x154   : > { %v482_v40 = vpop.f32.mrf.mxu0  ;;  %v514_v63 = vpop.f32.mrf.mxu1  ;;  %v523_v10 = vadd.f32 %v891_v56, %v806_v21 }
 0x155   : > { %v545_v44 = vadd.f32 %v544_v39, %v529_v38  ;;  %v483_v45 = vadd.f32 %v806_v21, %v482_v40  ;;  %v533_v53 = vmax.f32 %v491_v47, 0.0  ;;  %v515_v5 = vadd.f32 %v806_v21, %v514_v63 }
 0x156   : > { %v541_v14 = vmax.f32 %v523_v10, 0.0 }
 0x157   : > { %v546_v46 = vadd.f32 %v545_v44, %v530_v43  ;;  %v531_v48 = vmax.f32 %v483_v45, 0.0  ;;  %v539_v11 = vmax.f32 %v515_v5, 0.0 }
 0x159   : > { %v547_v52 = vadd.f32 %v546_v46, %v531_v48 }
 0x15b   : > { %v548_v54 = vadd.f32 %v547_v52, %v532_v50 }
 0x15d   : > { %v549_v59 = vadd.f32 %v548_v54, %v533_v53 }
 0x15f   : > { %v550_v62 = vadd.f32 %v549_v59, %v534_v58 }
 0x161   : > { %v551_v1 = vadd.f32 %v550_v62, %v535_v61 }
 0x163   : > { %v552_v4 = vadd.f32 %v551_v1, %v536_v0 }
 0x165   : > { %v553_v8 = vadd.f32 %v552_v4, %v537_v3 }
 0x167   : > { %v554_v9 = vadd.f32 %v553_v8, %v538_v7 }
 0x169   : > { %v555_v13 = vadd.f32 %v554_v9, %v539_v11 }
 0x16b   : > { %v556_v15 = vadd.f32 %v555_v13, %v540_v12 }
 0x16d   : > { %v557_v16 = vadd.f32 %v556_v15, %v541_v14 }
 0x16f   : > { %v558_v17 = vrot.slane %v557_v16, 4 }
 0x171   : > { %v559_v18 = vadd.f32 %v558_v17, %v557_v16 }
 0x173   : > { %v560_v19 = vrot.slane %v559_v18, 2 }
 0x175   : > { %v561_v20 = vadd.f32 %v560_v19, %v559_v18 }
 0x177   : > { %v562_v22 = vrot.slane %v561_v20, 1 }
 0x179   : > { %v563_v24 = vadd.f32 %v562_v22, %v561_v20  ;;  %569 = sbr.rel (%p823_p1) target bundleno = 614 (0x266), region = 60 }
 0x17b   : > { %v564_v25 = vadd.f32 %v563_v24, %v542_v23 }
 0x17d   : > { %565 = vst [vmem:[#allocation2] sm:$0x1] %v564_v25 }
 0x17e   : > { %v1072_v26 = vld [vmem:[#allocation8 + $0x38] sm:$0xff]   ;;  %v1292_v21 = vmov 0.0   ;;  %v1073_v27 = vld [vmem:[#allocation8 + $0x30] sm:$0xff]   ;;  %vm1293_vm0 = vmmov 0   ;;  %v1074_v28 = vld [vmem:[#allocation8 + $0x28] sm:$0xff]  }
 0x17f   : > { %892 = vmatprep.subr.bf16.mxu0 %v1292_v21  ;;  %908 = vmatprep.mubr.msk.bf16.mxu0 %vm1293_vm0, %v1292_v21  ;;  %v1075_v29 = vld [vmem:[#allocation8 + $0x20] sm:$0xff]   ;;  %v1076_v30 = vld [vmem:[#allocation8 + $0x18] sm:$0xff]   ;;  %v1077_v31 = vld [vmem:[#allocation8 + $0x10] sm:$0xff]  }
 0x180   : > { %893 = vmatpush3.bf16.msra.mxu0 %v1072_v26  ;;  %v1078_v32 = vld [vmem:[#allocation8 + $0x8] sm:$0xff]   ;;  %v1079_v35 = vld [vmem:[#allocation8] sm:$0xff]   ;;  %v589_v37 = vld [vmem:[%s1623_s15] sm:$0x1] }
 0x181   : > { %894 = vmatprep.subr.bf16.mxu0 %v1292_v21 }
 0x184   : > { %895 = vmatpush3.bf16.msra.mxu0 %v1073_v27  ;;  %v570_v33 = vld [vmem:[#allocation2] sm:$0x1] }
 0x185   : > { %896 = vmatprep.subr.bf16.mxu0 %v1292_v21  ;;  %v571_v34 = vmul.f32 0.00390625, %v570_v33 }
 0x187   : > { %v572_v36 = vpack.c.bf16 %v571_v34, %v571_v34 }
 0x188   : > { %897 = vmatpush3.bf16.msra.mxu0 %v1074_v28 }
 0x189   : > { %898 = vmatprep.subr.bf16.mxu0 %v1292_v21 }
 0x18c   : > { %899 = vmatpush3.bf16.msra.mxu0 %v1075_v29 }
 0x18d   : > { %900 = vmatprep.subr.bf16.mxu0 %v1292_v21 }
 0x190   : > { %901 = vmatpush3.bf16.msra.mxu0 %v1076_v30 }
 0x191   : > { %902 = vmatprep.subr.bf16.mxu0 %v1292_v21 }
 0x194   : > { %903 = vmatpush3.bf16.msra.mxu0 %v1077_v31 }
 0x195   : > { %904 = vmatprep.subr.bf16.mxu0 %v1292_v21 }
 0x198   : > { %905 = vmatpush3.bf16.msra.mxu0 %v1078_v32 }
 0x199   : > { %906 = vmatprep.subr.bf16.mxu0 %v1292_v21 }
 0x19c   : > { %907 = vmatpush3.bf16.msra.mxu0 %v1079_v35 }
 0x19f   : > { %909 = vmatmul.mubr.bf16.vlgmr.msra.gmra.mxu0 %v572_v36 }
 0x25f   : > { %v672_v38 = vpop.f32.mrf.mxu0 }
 0x260   : > { %v673_v39 = vadd.f32 %v672_v38, %v589_v37 }
 0x261   : > { %v910_v40 = vpop.f32.mrf.mxu0 }
 0x262   : > { %678 = vst [vmem:[%s1507_s9] sm:$0x1] %v673_v39 }
 0x263   : > { %v675_v41 = vpop.f32.mrf.mxu0 }
 0x265   : > { %v911_v42 = vpop.f32.mrf.mxu0 }
 0x266 PF: > { %s1624_s17 = sld [smem:[#allocation14_spill]]  ;;  %s692_s4 = sshll.u32 %s1507_s9, 4  ;;  %s693_s4 = int_to_ptr.vmem [resolvable:$true] %s692_s4 }
 0x267   : > { %s1625_s21 = sld [smem:[#allocation16_spill]]  ;;  %s680_s25 = scalar_lea.sflag [#allocation5], %s285_s2 }
 0x268   : > { %s1626_s5 = sld [smem:[#allocation23_spill]]  ;;  %s1160_s26 = scalar_lea.vmem %s693_s4, 16 }
 0x269   : > { %p1161_p3 = scmp.ne.s32.totalorder %s693_s4, %s1160_s26  ;;  %s1294_s30 = smov [#allocation9]  }
 0x26a   : > { %s1164_s7 = sshll.u32 %s1294_s30, 4  ;;  %s1165_s7 = int_to_ptr.vmem [resolvable:$false] %s1164_s7 }
 0x26b   : > { %s1166_s12 = scalar_lea.vmem %s1165_s7, 32  ;;  %p1167_p5 = scmp.lt.s32.totalorder %s693_s4, %s1165_s7 }
 0x26c   : > { %s832_s3 = sshll.u32 %s1624_s17, 4  ;;  %p1168_p12 = scmp.lt.s32.totalorder %s1166_s12, %s1160_s26 }
 0x26d   : > { %p1627_p9 = scmp.ne.s32.totalorder %s1625_s21, 0 }
 0x26e   : > { %s690_s18 = scalar_lea.hbm %s1626_s5, %s832_s3  ;;  %p1169_p0 = por %p1168_p12, %p1167_p5 }
 0x26f   : > { %p1162_p11 = pnand %p1161_p3, %p1627_p9 }
 0x271   : > { %p1163_p6 = pneg %p1162_p11 }
 0x273   : > { %p1170_p2 = pnand %p1169_p0, %p1163_p6 }
 0x275   : > { %1173 = shalt.err (!%p1170_p2)
}
 0x276   : > { %s1174_s6 = scalar_lea.hbm %s690_s18, 16  ;;  %s1178_s8 = scalar_lea.hbm %s1626_s5, 32 }
 0x277   : > { %p1175_p4 = scmp.ne.s32.totalorder %s690_s18, %s1174_s6  ;;  %p1179_p10 = scmp.lt.s32.totalorder %s690_s18, %s1626_s5 }
 0x278   : > { %p1180_p7 = scmp.lt.s32.totalorder %s1178_s8, %s1174_s6 }
 0x279   : > { %p1176_p13 = pnand %p1175_p4, %p1627_p9 }
 0x27a   : > { %p1181_p1 = por %p1180_p7, %p1179_p10 }
 0x27b   : > { %p1177_p8 = pneg %p1176_p13 }
 0x27d   : > { %p1182_p3 = pnand %p1181_p1, %p1177_p8 }
 0x27f   : > { %1185 = shalt.err (!%p1182_p3)
}
 0x280   : > { %938 = dma.vmem_to_hbm [thread:$0]  (%p1627_p9), %s693_s4, 16, %s690_s18, %s680_s25  }
 0x281 PF: > { %s1628_s16 = sld [smem:[#allocation13_spill]]  ;;  %p960_p11 = scmp.ge.s32.totalorder %s1284_s28, 2 }
 0x282   : > { %s1629_s15 = sld [smem:[#allocation17_spill]] }
 0x287   : > { %s704_s17 = sand.u32 1, %s1628_s16  }
 0x288   : > { %p1630_p6 = scmp.ne.s32.totalorder %s1629_s15, 0  ;;  %s705_s3 = scalar_lea.sflag [#allocation5], %s704_s17 }
 0x28a   : > { %p952_p5 = pnand %p960_p11, %p1630_p6 }
 0x28c   : > { %p953_p12 = pneg %p952_p5 }
 0x28e   : > { %1239 = dma.done.wait (%p953_p12), %s705_s3, 16  }
 0x28f   : > { %1241 = vsyncadd (%p953_p12), %s705_s3, 4294967280  ;;  %s22_s28 = sadd.s32 1, %s1284_s28   ;;  %s1631_s24 = sld [smem:[#allocation15_spill]] }
 0x290   : > { %p19_p0 = scmp.ge.s32.totalorder %s22_s28, 6   ;;  %s1632_s26 = sld [smem:[#allocation18_spill]] }
 0x291   : > { %s1633_s18 = smov %s1248_s19  ;;  %s1634_s19 = smov %s1252_s20 }
 0x292   : > { %s1635_s20 = smov %s1468_s13  ;;  %s1636_s21 = smov %s1260_s22 }
 0x293   : > { %s1637_s22 = smov %s1264_s23  ;;  %s1638_s23 = smov %s1471_s10 }
 0x294   : > { %s1639_s25 = smov %s1280_s27  ;;  %s1640_s27 = smov %s1646_s14 }
 0x295   :  { %21 = sbr.rel (!%p19_p0) target bundleno = 16 (0x10), region = 101 }
 0x29a   :  { %709 = vsyncpa [#allocation4], 1 }
 0x29b   :  { %711 = vsyncpa [#allocation4 + $0x1], 1 }
 0x29c   :  { %712 = vsyncpa [#allocation7], 1 }
 0x29d   :  { %713 = vsyncpa [#allocation5], 1 }
 0x29e   :  { %715 = vsyncpa [#allocation5 + $0x1], 1 }

</bundles_post_ra>
